<compile_context>
chip_gen: v5e
topology: v5e:2x2
jax: 0.10.0
libtpu: 0.0.40
codegen_flags: <defaults>
</compile_context>

<pallas_src>
import functools

import jax
import jax.numpy as jnp
from jax import lax
from jax.experimental import pallas as pl
from jax.experimental.pallas import tpu as pltpu

ALPHA = 0.25
GAMMA = 2               # fixed to 2; implemented as an explicit square below
MAX_BLOCK_ROWS = 2048   # (2048, 128) f32 = 1 MiB per input per pipeline buffer


def _round_up(a, b):
    return (a + b - 1) // b * b


def _min_sublanes(dtype):
    # Native sublane tile: f32 -> 8, bf16/f16 -> 16, int8/bool/fp8 -> 32.
    return max(8, 32 // jnp.dtype(dtype).itemsize)


def _num_tensorcores():
    # v4 / v5p (megacore) and v7x expose 2 TensorCores per device; v5e / v6e
    # have a single TensorCore.  Wrong detection only costs performance.
    try:
        kind = jax.devices()[0].device_kind.lower()
    except Exception:
        return 1
    return 2 if any(tag in kind for tag in ("v4", "v5p", "v7", "7x")) else 1


def _focal_loss_kernel(x_ref, t_ref, out_ref, *, n, tile_rows,
                       blocks_per_core, total_blocks, tail_mask):
    c = pl.program_id(0)            # core / partial-sum index
    i = pl.program_id(1)            # reduction step within this core
    b = c * blocks_per_core + i     # un-clamped linear block index
    last_b = total_blocks - 1

    @pl.when(i == 0)
    def _():
        out_ref[...] = jnp.zeros_like(out_ref)

    x = x_ref[...].astype(jnp.float32)
    traw = t_ref[...]
    if jnp.issubdtype(traw.dtype, jnp.floating):
        tb = traw > jnp.asarray(0.5, traw.dtype)
    else:
        tb = traw > 0

    # Numerically-stable BCE-with-logits via a boolean-target select:
    #   bce = max(x, 0) - x*t + log1p(exp(-|x|)) == max(t ? -x : x, 0) + log1p(e)
    e = jnp.exp(-jnp.abs(x))
    bce = jnp.maximum(jnp.where(tb, -x, x), 0.0) + jnp.log1p(e)
    pt = jnp.exp(-bce)                        # sigmoid(x) if t==1 else 1-sigmoid(x)
    at = jnp.where(tb, 1.0 - ALPHA, ALPHA)    # == alpha.gather(0, targets)
    d = 1.0 - pt
    f_loss = at * (d * d) * bce               # gamma == 2 as an explicit square

    def accumulate(vals):
        # Pure-VPU accumulation into the resident (8,128) f32 output block.
        out_ref[...] += vals.reshape(tile_rows // 8, 8, 128).sum(axis=0)

    if tail_mask:
        @pl.when(b < last_b)
        def _():
            accumulate(f_loss)

        @pl.when(b == last_b)
        def _():
            # Only the very last block can contain wrapper zero-padding or
            # Pallas edge-block garbage; mask it here only (select => NaN-safe).
            full_rows = n // 128
            rem = n % 128
            row = (lax.broadcasted_iota(jnp.int32, (tile_rows, 128), 0)
                   + last_b * tile_rows)
            valid = row < full_rows
            if rem:
                lane = lax.broadcasted_iota(jnp.int32, (tile_rows, 128), 1)
                valid = valid | ((row == full_rows) & (lane < rem))
            accumulate(jnp.where(valid, f_loss, 0.0))
    else:
        @pl.when(b <= last_b)   # skips duplicated (clamped) grid steps, if any
        def _():
            accumulate(f_loss)


def focal_loss(inputs, targets, *, block_rows=MAX_BLOCK_ROWS):
    """Mean focal loss (alpha=0.25, gamma=2) over flat binary targets."""
    assert block_rows % 32 == 0
    x = jnp.ravel(inputs)
    t = jnp.ravel(targets)
    if t.dtype == jnp.bool_:
        t = t.astype(jnp.int8)   # 1-byte stream; avoids i1 load corner cases
    n = x.shape[0]
    assert n > 0

    rows = pl.cdiv(n, 128)
    row_align = max(_min_sublanes(x.dtype), _min_sublanes(t.dtype))
    if rows <= block_rows:
        # Small array: one block equal to the (row-aligned) array.
        padded_rows = _round_up(rows, row_align)
        tile_rows = padded_rows
    else:
        # Large array: fixed big blocks; the last block may be partial and is
        # masked in-kernel -- no row padding, no wrapper copy.
        padded_rows = rows
        tile_rows = block_rows

    padded_n = padded_rows * 128
    if padded_n != n:
        # Only lane-misaligned (n % 128 != 0) or tiny inputs pay this copy.
        x = jnp.pad(x, (0, padded_n - n))
        t = jnp.pad(t, (0, padded_n - n))
    x2d = x.reshape(padded_rows, 128)
    t2d = t.reshape(padded_rows, 128)

    total_blocks = pl.cdiv(padded_rows, tile_rows)
    num_cores = _num_tensorcores()
    if total_blocks < num_cores:
        num_cores = 1
    blocks_per_core = pl.cdiv(total_blocks, num_cores)
    tail_mask = total_blocks * tile_rows * 128 != n

    kernel = functools.partial(
        _focal_loss_kernel, n=n, tile_rows=tile_rows,
        blocks_per_core=blocks_per_core, total_blocks=total_blocks,
        tail_mask=tail_mask)

    def in_map(c, i):
        # Clamp so grid steps past the last block just re-read it (the kernel
        # skips their accumulation).
        return (jnp.minimum(c * blocks_per_core + i, total_blocks - 1), 0)

    partials = pl.pallas_call(
        kernel,
        out_shape=jax.ShapeDtypeStruct((num_cores * 8, 128), jnp.float32),
        grid=(num_cores, blocks_per_core),
        in_specs=[pl.BlockSpec((tile_rows, 128), in_map),
                  pl.BlockSpec((tile_rows, 128), in_map)],
        out_specs=pl.BlockSpec((8, 128), lambda c, i: (c, 0)),
        compiler_params=pltpu.CompilerParams(
            # TODO(synk): on v7x, verify this leading axis really shards across
            # both TensorCores; switch to pltpu.CORE_PARALLEL if it does not.
            dimension_semantics=("parallel", "arbitrary")),
    )(x2d, t2d)

    return jnp.sum(partials) / jnp.float32(n)


def focal_loss_ref(inputs, targets):
    """Pure-JAX reference matching the PyTorch forward."""
    x = jnp.ravel(inputs).astype(jnp.float32)
    t = jnp.ravel(targets).astype(jnp.float32)
    bce = jnp.maximum(x, 0.0) - x * t + jnp.log1p(jnp.exp(-jnp.abs(x)))
    at = jnp.where(t > 0.5, 1.0 - ALPHA, ALPHA)
    pt = jnp.exp(-bce)
    return jnp.mean(at * (1.0 - pt) ** GAMMA * bce)


if __name__ == "__main__":
    key = jax.random.PRNGKey(0)
    keys = jax.random.split(key, 8)

    def check(out, ref, tag):
        assert jnp.allclose(out, ref, rtol=1e-4, atol=1e-6), (tag, out, ref)

    # 1) f32 logits / f32 binary targets at the module's natural small shape.
    shape = (2, 4, 16, 16)
    x = jax.random.normal(keys[0], shape, dtype=jnp.float32)
    t = jax.random.bernoulli(keys[1], p=0.3, shape=shape).astype(jnp.float32)
    out = focal_loss(x, t)
    jax.block_until_ready(out)
    check(out, focal_loss_ref(x, t), "f32")

    # 2) Narrow-dtype streaming path: bf16 logits + int8 targets.
    xb = jax.random.normal(keys[2], shape, dtype=jnp.float32).astype(jnp.bfloat16)
    tb = jax.random.bernoulli(keys[3], p=0.5, shape=shape).astype(jnp.int8)
    out_b = focal_loss(xb, tb)
    jax.block_until_ready(out_b)
    check(out_b, focal_loss_ref(xb, tb), "bf16/int8")

    # 3) Ragged (lane-misaligned) length: exercises pad + tail-mask path.
    xr = jax.random.normal(keys[4], (1000,), dtype=jnp.float32)
    tr = jax.random.bernoulli(keys[5], p=0.5, shape=(1000,)).astype(jnp.float32)
    out_r = focal_loss(xr, tr)
    jax.block_until_ready(out_r)
    check(out_r, focal_loss_ref(xr, tr), "ragged")

    # 4) Multi-block grid with a partial last block (tiny block size so the
    #    multi-step / clamped-grid / tail-mask paths run at small scale).
    xm = jax.random.normal(keys[6], (40000,), dtype=jnp.float32)
    tm = jax.random.bernoulli(keys[7], p=0.4, shape=(40000,)).astype(jnp.float32)
    out_m = focal_loss(xm, tm, block_rows=64)
    jax.block_until_ready(out_m)
    check(out_m, focal_loss_ref(xm, tm), "multi-block")

    print("KERNEL_OK")
</pallas_src>

<mosaic_0001>
module attributes {stable_mosaic.version = 11 : i64} {
  func.func @_focal_loss_kernel(%arg0: i32, %arg1: i32, %arg2: memref<16x128xf32, #tpu.memory_space<vmem>>, %arg3: memref<16x128xf32, #tpu.memory_space<vmem>>, %arg4: memref<8x128xf32, #tpu.memory_space<vmem>>) attributes {dimension_semantics = [#tpu.dimension_semantics<parallel>, #tpu.dimension_semantics<arbitrary>], iteration_bounds = array<i64: 1, 1>, scalar_prefetch = 0 : i64, scratch_operands = 0 : i64, tpu.core_type = #tpu.core_type<tc>, window_params = [{transform_indices = @transform_0, window_bounds = array<i64: 16, 128>}, {transform_indices = @transform_1, window_bounds = array<i64: 16, 128>}, {transform_indices = @transform_2, window_bounds = array<i64: 8, 128>}]} {
    %c1_i32 = arith.constant 1 : i32
    %0 = arith.muli %arg0, %c1_i32 : i32
    %1 = arith.addi %0, %arg1 : i32
    %c0_i32 = arith.constant 0 : i32
    %2 = arith.cmpi eq, %arg1, %c0_i32 : i32
    %3 = arith.extui %2 : i1 to i32
    %c0_i32_0 = arith.constant 0 : i32
    %4 = arith.cmpi ne, %3, %c0_i32_0 : i32
    scf.if %4 {
      %cst_13 = arith.constant 0.000000e+00 : f32
      %34 = vector.broadcast %cst_13 : f32 to vector<8x128xf32>
      %c0_14 = arith.constant 0 : index
      %c0_15 = arith.constant 0 : index
      %35 = vector.load %arg4[%c0_14, %c0_15] : memref<8x128xf32, #tpu.memory_space<vmem>>, vector<8x128xf32>
      tpu.vector_store %arg4[%c0_14, %c0_15], %34 {strides = array<i32>} : memref<8x128xf32, #tpu.memory_space<vmem>>, vector<8x128xf32>,
    } else {
    }
    %c0 = arith.constant 0 : index
    %c0_1 = arith.constant 0 : index
    %5 = vector.load %arg2[%c0, %c0_1] : memref<16x128xf32, #tpu.memory_space<vmem>>, vector<16x128xf32>
    %c0_2 = arith.constant 0 : index
    %c0_3 = arith.constant 0 : index
    %6 = vector.load %arg3[%c0_2, %c0_3] : memref<16x128xf32, #tpu.memory_space<vmem>>, vector<16x128xf32>
    %cst = arith.constant 5.000000e-01 : f32
    %7 = vector.broadcast %cst : f32 to vector<16x128xf32>
    %8 = arith.cmpf ogt, %6, %7 : vector<16x128xf32>
    %9 = math.absf %5 : vector<16x128xf32>
    %cst_4 = arith.constant 0.000000e+00 : f32
    %10 = vector.broadcast %cst_4 : f32 to vector<16x128xf32>
    %11 = arith.subf %10, %9 : vector<16x128xf32>
    %12 = math.exp %11 : vector<16x128xf32>
    %cst_5 = arith.constant 0.000000e+00 : f32
    %13 = vector.broadcast %cst_5 : f32 to vector<16x128xf32>
    %14 = arith.subf %13, %5 : vector<16x128xf32>
    %15 = arith.select %8, %14, %5 : vector<16x128xi1>, vector<16x128xf32>
    %cst_6 = arith.constant 0.000000e+00 : f32
    %16 = vector.broadcast %cst_6 : f32 to vector<16x128xf32>
    %17 = arith.maximumf %15, %16 : vector<16x128xf32>
    %18 = math.log1p %12 : vector<16x128xf32>
    %19 = arith.addf %17, %18 : vector<16x128xf32>
    %cst_7 = arith.constant 0.000000e+00 : f32
    %20 = vector.broadcast %cst_7 : f32 to vector<16x128xf32>
    %21 = arith.subf %20, %19 : vector<16x128xf32>
    %22 = math.exp %21 : vector<16x128xf32>
    %cst_8 = arith.constant 7.500000e-01 : f32
    %cst_9 = arith.constant 2.500000e-01 : f32
    %23 = vector.broadcast %cst_8 : f32 to vector<16x128xf32>
    %24 = vector.broadcast %cst_9 : f32 to vector<16x128xf32>
    %25 = arith.select %8, %23, %24 : vector<16x128xi1>, vector<16x128xf32>
    %cst_10 = arith.constant 1.000000e+00 : f32
    %26 = vector.broadcast %cst_10 : f32 to vector<16x128xf32>
    %27 = arith.subf %26, %22 : vector<16x128xf32>
    %28 = arith.mulf %27, %27 : vector<16x128xf32>
    %29 = arith.mulf %25, %28 : vector<16x128xf32>
    %30 = arith.mulf %29, %19 : vector<16x128xf32>
    %c0_i32_11 = arith.constant 0 : i32
    %31 = arith.cmpi sle, %1, %c0_i32_11 : i32
    %32 = arith.extui %31 : i1 to i32
    %c0_i32_12 = arith.constant 0 : i32
    %33 = arith.cmpi ne, %32, %c0_i32_12 : i32
    scf.if %33 {
      %c0_13 = arith.constant 0 : index
      %c0_14 = arith.constant 0 : index
      %34 = vector.load %arg4[%c0_13, %c0_14] : memref<8x128xf32, #tpu.memory_space<vmem>>, vector<8x128xf32>
      %35 = vector.shape_cast %30 : vector<16x128xf32> to vector<2x8x128xf32>
      %cst_15 = arith.constant dense<0.000000e+00> : vector<8x128xf32>
      %36 = vector.multi_reduction <add>, %35, %cst_15 [0] : vector<2x8x128xf32> to vector<8x128xf32>
      %37 = arith.addf %34, %36 : vector<8x128xf32>
      %c0_16 = arith.constant 0 : index
      %c0_17 = arith.constant 0 : index
      %38 = vector.load %arg4[%c0_16, %c0_17] : memref<8x128xf32, #tpu.memory_space<vmem>>, vector<8x128xf32>
      tpu.vector_store %arg4[%c0_16, %c0_17], %37 {strides = array<i32>} : memref<8x128xf32, #tpu.memory_space<vmem>>, vector<8x128xf32>,
    } else {
    }
    return
  }
  func.func @transform_0(%arg0: i32, %arg1: i32) -> (i32, i32) {
    %c1_i32 = arith.constant 1 : i32
    %0 = arith.muli %arg0, %c1_i32 : i32
    %1 = arith.addi %0, %arg1 : i32
    %c0_i32 = arith.constant 0 : i32
    %2 = arith.minsi %1, %c0_i32 : i32
    %c0_i32_0 = arith.constant 0 : i32
    %c0_i32_1 = arith.constant 0 : i32
    return %2, %c0_i32_0 : i32, i32
  }
  func.func @transform_1(%arg0: i32, %arg1: i32) -> (i32, i32) {
    %c1_i32 = arith.constant 1 : i32
    %0 = arith.muli %arg0, %c1_i32 : i32
    %1 = arith.addi %0, %arg1 : i32
    %c0_i32 = arith.constant 0 : i32
    %2 = arith.minsi %1, %c0_i32 : i32
    %c0_i32_0 = arith.constant 0 : i32
    %c0_i32_1 = arith.constant 0 : i32
    return %2, %c0_i32_0 : i32, i32
  }
  func.func @transform_2(%arg0: i32, %arg1: i32) -> (i32, i32) {
    %c0_i32 = arith.constant 0 : i32
    %c0_i32_0 = arith.constant 0 : i32
    return %arg0, %c0_i32 : i32, i32
  }
}

</mosaic_0001>

<bundles_post_ra>
// kernel: tpu_custom_call.1
= control target key start
LH: loop header
LB: loop body
LE: loop exit
PB: predicated region body
PF: predicated region fallthrough
CT: control target
= control target key end

     0   :  { %7 = vsyncpa [#allocation3], 0  ;;  %s287_s0 = inlined_call_operand.hbm [shape: f32[16,128], index: 0, kind: input, shape index: {}]   ;;  %s288_s1 = inlined_call_operand.hbm [shape: f32[16,128], index: 1, kind: input, shape index: {}]   ;;  %s289_s2 = inlined_call_operand.hbm [shape: f32[8,128], index: 2, kind: output, shape index: {}]  }
   0x1   :  { %8 = vsyncpa [#allocation6], 0 }
   0x2   :  { %9 = vsyncpa [#allocation4], 0  ;;  %s20_s11 = sshll.u32 %s287_s0, 4  ;;  %s253_s12 = smov [#allocation2]   ;;  %s21_s11 = int_to_ptr.hbm [resolvable:$true] %s20_s11 }
   0x3   :  { %s22_s13 = sshll.u32 %s253_s12, 4  ;;  %s39_s16 = sshll.u32 %s288_s1, 4  ;;  %s23_s13 = int_to_ptr.vmem [resolvable:$true] %s22_s13  ;;  %s40_s16 = int_to_ptr.hbm [resolvable:$true] %s39_s16 }
   0x4   :  { %s254_s17 = smov 128   ;;  %s255_s18 = smov 8  }
   0x5   :  { %28 = dma.hbm_to_vmem [thread:$0]  %s21_s11, 256, %s23_s13, [#allocation3], %s254_s17, %s254_s17, %s255_s18  }
   0x6   :  { %s256_s19 = smov [#allocation5]  }
   0x7   :  { %s41_s20 = sshll.u32 %s256_s19, 4  ;;  %s42_s20 = int_to_ptr.vmem [resolvable:$true] %s41_s20 }
   0x8   :  { %47 = dma.hbm_to_vmem [thread:$0]  %s40_s16, 256, %s42_s20, [#allocation6], %s254_s17, %s254_s17, %s255_s18  }
   0x9   :  { %247 = dma.done.wait [#allocation3], 256  }
   0xa   :  { %248 = vsyncadd [#allocation3], 4294967040 }
   0xb   :  { %249 = dma.done.wait [#allocation6], 256  }
   0xc   :  { %250 = vsyncadd [#allocation6], 4294967040  ;;  %v70_v0 = vld [vmem:[#allocation2] sm:$0xff]  ;;  %v71_v1 = vld [vmem:[#allocation2 + $0x8] sm:$0xff]  ;;  %v257_v43 = vmov 0.25   ;;  %s258_s0 = smov [#allocation7]  }
   0xd   :  { %v76_v2 = vand.u32 2147483647, %v70_v0  ;;  %v77_v3 = vand.u32 2147483647, %v71_v1  ;;  %v72_v9 = vld [vmem:[#allocation5] sm:$0xff]  ;;  %v73_v11 = vld [vmem:[#allocation5 + $0x8] sm:$0xff] }
   0xe   :  { %v84_v14 = vsub.f32 0.0, %v70_v0  ;;  %vm74_vm0 = vcmp.gt.f32.partialorder %v72_v9, 0.5  ;;  %v85_v17 = vsub.f32 0.0, %v71_v1  ;;  %vm75_vm1 = vcmp.gt.f32.partialorder %v73_v11, 0.5  ;;  %s139_s1 = sshll.u32 %s258_s0, 4  ;;  %s141_s23 = sshll.u32 %s289_s2, 4  ;;  %s140_s1 = int_to_ptr.vmem [resolvable:$true] %s139_s1  ;;  %s142_s23 = int_to_ptr.hbm [resolvable:$true] %s141_s23 }
   0xf   :  { %v78_v4 = vsub.f32 0.0, %v76_v2  ;;  %v79_v5 = vsub.f32 0.0, %v77_v3  ;;  %v116_v44 = vsel %vm74_vm0, 0.75, %v257_v43  ;;  %v117_v46 = vsel %vm75_vm1, 0.75, %v257_v43 }
  0x10   :  { %v86_v21 = vsel %vm74_vm0, %v84_v14, %v70_v0  ;;  %v87_v23 = vsel %vm75_vm1, %v85_v17, %v71_v1 }
  0x11   :  { %v80_v6 = vmul.f32 1.442695, %v78_v4  ;;  %v82_v7 = vmul.f32 1.442695, %v79_v5  ;;  %v88_v26 = vmax.f32 %v86_v21, 0.0  ;;  %v89_v29 = vmax.f32 %v87_v23, 0.0 }
  0x13   :  { %163 = vpow2.f32 %v80_v6 }
  0x14   :  { %165 = vpow2.f32 %v82_v7 }
  0x19   :  { %v164_v8 = vpop.eup %163 }
  0x1a   :  { %v166_v10 = vpop.eup %165  ;;  %v90_v12 = vadd.f32 1.0, %v164_v8  ;;  %v93_v13 = vmul.f32 -0.5, %v164_v8  ;;  %v96_v19 = vand.u32 2147483647, %v164_v8 }
  0x1b   :  { %v99_v15 = vadd.f32 1.0, %v166_v10  ;;  %v102_v16 = vmul.f32 -0.5, %v166_v10  ;;  %v105_v22 = vand.u32 2147483647, %v166_v10 }
  0x1c   :  { %167 = vlog2.f32 %v90_v12  ;;  %v94_v18 = vadd.f32 1.0, %v93_v13  ;;  %vm97_vm2 = vcmp.lt.f32.partialorder %v96_v19, 0.0004427343 }
  0x1d   :  { %169 = vlog2.f32 %v99_v15  ;;  %v103_v20 = vadd.f32 1.0, %v102_v16  ;;  %vm106_vm3 = vcmp.lt.f32.partialorder %v105_v22, 0.0004427343 }
  0x1e   :  { %v95_v24 = vmul.f32 %v164_v8, %v94_v18 }
  0x1f   :  { %v104_v27 = vmul.f32 %v166_v10, %v103_v20 }
  0x22   :  { %v168_v25 = vpop.eup %167 }
  0x23   :  { %v170_v28 = vpop.eup %169  ;;  %v92_v30 = vmul.f32 0.6931472, %v168_v25 }
  0x24   :  { %v101_v31 = vmul.f32 0.6931472, %v170_v28 }
  0x25   :  { %v98_v32 = vsel %vm97_vm2, %v95_v24, %v92_v30 }
  0x26   :  { %v107_v33 = vsel %vm106_vm3, %v104_v27, %v101_v31  ;;  %v108_v34 = vadd.f32 %v98_v32, %v88_v26 }
  0x27   :  { %v109_v35 = vadd.f32 %v107_v33, %v89_v29 }
  0x28   :  { %v110_v36 = vsub.f32 0.0, %v108_v34 }
  0x29   :  { %v111_v37 = vsub.f32 0.0, %v109_v35 }
  0x2a   :  { %v112_v38 = vmul.f32 1.442695, %v110_v36 }
  0x2b   :  { %v114_v39 = vmul.f32 1.442695, %v111_v37 }
  0x2c   :  { %171 = vpow2.f32 %v112_v38 }
  0x2d   :  { %173 = vpow2.f32 %v114_v39 }
  0x32   :  { %v172_v40 = vpop.eup %171 }
  0x33   :  { %v174_v41 = vpop.eup %173  ;;  %v118_v42 = vsub.f32 1.0, %v172_v40 }
  0x34   :  { %v119_v45 = vsub.f32 1.0, %v174_v41 }
  0x35   :  { %v120_v47 = vmul.f32 %v118_v42, %v118_v42 }
  0x36   :  { %v121_v48 = vmul.f32 %v119_v45, %v119_v45 }
  0x37   :  { %v122_v49 = vmul.f32 %v120_v47, %v116_v44 }
  0x38   :  { %v123_v50 = vmul.f32 %v121_v48, %v117_v46 }
  0x39   :  { %v124_v51 = vmul.f32 %v122_v49, %v108_v34 }
  0x3a   :  { %v125_v52 = vmul.f32 %v123_v50, %v109_v35 }
  0x3c   :  { %v131_v53 = vadd.f32 %v125_v52, %v124_v51 }
  0x3e   :  { %133 = vst [vmem:[#allocation7] sm:$0xff] %v131_v53 }
  0x3f   :  { %144 = dma.vmem_to_hbm [thread:$0]  %s140_s1, 128, %s142_s23, [#allocation4]  }
  0x40   :  { %251 = dma.done.wait [#allocation4], 128  }
  0x41   :  { %252 = vsyncadd [#allocation4], 4294967168 }
  0x42   :  { %149 = vsyncpa [#allocation3], 1 }
  0x43   :  { %150 = vsyncpa [#allocation6], 1 }
  0x44   :  { %151 = vsyncpa [#allocation4], 1 }

</bundles_post_ra>
